<compile_context>
chip_gen: v6e
topology: v6e:2x2x1
jax: 0.10.0
libtpu: 0.0.40
codegen_flags: <defaults>
</compile_context>

<pallas_src>
import functools
import math

import jax
import jax.numpy as jnp
from jax import lax
from jax.experimental import pallas as pl
from jax.experimental.pallas import tpu as pltpu

_VMEM_LIMIT = 32 * 1024 * 1024  # <= physical VMEM on v5e/v6e/v7x, >= needs here


# --------------------------------------------------------------------------- #
# Kernels
# --------------------------------------------------------------------------- #
def _qkv_rope_kernel(x_ref, w_ref, b_ref, cos_ref, sin_hi_ref, sin_lo_ref,
                     q_ref, k_ref, v_ref):
    """Fused c_attn projection + rotary embedding for one (batch, token-tile).

    Only 3 CxC bf16 matmuls run on the MXU; the interleaved pair swap for RoPE
    is built from two lane rotations (XLU) multiplied by zero-masked signed-sin
    tables (wrap / head-boundary terms of the rolls hit zero coefficients).
    """
    x = x_ref[0]                         # (block_t, C) bf16
    cos = cos_ref[...]                   # (block_t, C) f32
    sin_hi = sin_hi_ref[...]             # pairs with roll(p, C-1)
    sin_lo = sin_lo_ref[...]             # pairs with roll(p, 1)
    c = x.shape[-1]

    def proj(i):
        return (jnp.dot(x, w_ref[i], preferred_element_type=jnp.float32)
                + b_ref[i])              # (block_t, C) f32

    def rope(p):
        hi = pltpu.roll(p, shift=c - 1, axis=1)
        lo = pltpu.roll(p, shift=1, axis=1)
        return p * cos + hi * sin_hi + lo * sin_lo

    # Compute + store one output at a time to keep vreg pressure low.
    q_ref[0] = rope(proj(0)).astype(q_ref.dtype)
    k_ref[0] = rope(proj(1)).astype(k_ref.dtype)
    v_ref[0] = proj(2).astype(v_ref.dtype)


def _flash_attn_kernel(q_ref, k_ref, v_ref, o_ref, m_ref, l_ref, acc_ref, *,
                       sm_scale, block_q, block_k, heads, head_dim):
    """Causal flash attention for one (batch, head-group, q-tile); kv innermost.

    Blocks are (block, heads*head_dim) slabs of the (B, T, C) layout — no head
    transposes, lane-dense loads/stores.  Per-head contractions are unrolled.
    """
    qi = pl.program_id(2)
    ki = pl.program_id(3)

    @pl.when(ki == 0)
    def _init():
        m_ref[...] = jnp.full_like(m_ref, -1e30)
        l_ref[...] = jnp.zeros_like(l_ref)
        acc_ref[...] = jnp.zeros_like(acc_ref)

    def update(apply_mask):
        q = q_ref[0]                     # (block_q, heads*head_dim) bf16
        k = k_ref[0]                     # (block_k, heads*head_dim) bf16
        v = v_ref[0]
        if apply_mask:
            row = qi * block_q + lax.broadcasted_iota(
                jnp.int32, (block_q, block_k), 0)
            col = ki * block_k + lax.broadcasted_iota(
                jnp.int32, (block_q, block_k), 1)
            causal = row >= col
        for h in range(heads):
            sl = slice(h * head_dim, (h + 1) * head_dim)
            s = lax.dot_general(q[:, sl], k[:, sl], (((1,), (1,)), ((), ())),
                                preferred_element_type=jnp.float32) * sm_scale
            if apply_mask:
                s = jnp.where(causal, s, -1e30)
            m_prev = m_ref[:, h:h + 1]
            m_new = jnp.maximum(m_prev, jnp.max(s, axis=-1, keepdims=True))
            alpha = jnp.exp(m_prev - m_new)
            p = jnp.exp(s - m_new)                          # f32 (v5e-safe)
            l_ref[:, h:h + 1] = (alpha * l_ref[:, h:h + 1]
                                 + jnp.sum(p, axis=-1, keepdims=True))
            m_ref[:, h:h + 1] = m_new
            pv = lax.dot_general(p.astype(v.dtype), v[:, sl],
                                 (((1,), (0,)), ((), ())),
                                 preferred_element_type=jnp.float32)
            acc_ref[:, sl] = alpha * acc_ref[:, sl] + pv

    # Interior blocks (strictly below the diagonal): no masking work at all.
    @pl.when(ki < qi)
    def _interior():
        update(apply_mask=False)

    # Diagonal blocks: apply the causal mask.  Blocks above the diagonal are
    # skipped entirely (and never DMA'd thanks to the clamped k/v index_map).
    @pl.when(ki == qi)
    def _diag():
        update(apply_mask=True)

    @pl.when(ki == pl.num_programs(3) - 1)
    def _finalize():
        inv_l = pl.reciprocal(l_ref[...], approx=True)      # (block_q, heads)
        for h in range(heads):
            sl = slice(h * head_dim, (h + 1) * head_dim)
            acc_ref[:, sl] = acc_ref[:, sl] * inv_l[:, h:h + 1]
        o_ref[0] = acc_ref[...].astype(o_ref.dtype)          # 128-lane dense


def _linear_kernel(x_ref, w_ref, b_ref, o_ref):
    o_ref[...] = (jnp.dot(x_ref[...], w_ref[...],
                          preferred_element_type=jnp.float32)
                  + b_ref[...]).astype(o_ref.dtype)


# --------------------------------------------------------------------------- #
# Host-side helpers
# --------------------------------------------------------------------------- #
@functools.lru_cache(maxsize=None)
def _roll_matches_numpy():
    """One-off probe: True iff pltpu.roll follows jnp.roll (out[j] = x[j-shift]).

    Guards the RoPE lane swizzle against any rotation-direction convention
    difference across jax releases; runs once, outside the steady-state path.
    """
    def kern(x_ref, o_ref):
        o_ref[...] = pltpu.roll(x_ref[...], shift=1, axis=1)

    x = jnp.broadcast_to(jnp.arange(128, dtype=jnp.float32), (8, 128))
    out = pl.pallas_call(
        kern, out_shape=jax.ShapeDtypeStruct((8, 128), jnp.float32))(x)
    return bool(out[0, 1] == 0.0)


def _rope_tables(T, H, D, base=10000.0):
    """Combined (t + h)*theta interleaved-RoPE tables, shape (T, H*D) each.

    Returns (cos, sin_next, sin_prev) so that
        rope(p)[j] = p[j]*cos[j] + p[j+1]*sin_next[j] + p[j-1]*sin_prev[j]
    with sin_next nonzero only on even lanes (-sin) and sin_prev only on odd
    lanes (+sin); zero coefficients kill roll wrap / head-boundary terms.
    """
    j = jnp.arange(D // 2, dtype=jnp.float32)
    theta = 1.0 / (base ** (2.0 * j / D))                              # (D/2,)
    pos = (jnp.arange(T, dtype=jnp.float32)[:, None, None]
           + jnp.arange(H, dtype=jnp.float32)[None, :, None])          # (T,H,1)
    ang = pos * theta[None, None, :]                                   # (T,H,D/2)
    cos = jnp.repeat(jnp.cos(ang), 2, axis=-1).reshape(T, H * D)
    sin = jnp.sin(ang)
    zeros = jnp.zeros_like(sin)
    sin_next = jnp.stack([-sin, zeros], axis=-1).reshape(T, H * D)     # even lanes
    sin_prev = jnp.stack([zeros, sin], axis=-1).reshape(T, H * D)      # odd lanes
    return cos, sin_next, sin_prev


def attention_forward(x, w_attn, b_attn, w_proj, b_proj, n_head, *,
                      block_t=None, block_q=None, block_k=None, block_n=None):
    """Pallas forward of the PyTorch Attention module.

    x: (B, T, C) f32; w_attn: (3C, C); b_attn: (3C,); w_proj: (C, C);
    b_proj: (C,)  (torch nn.Linear layouts).
    """
    B, T, C = x.shape
    H = n_head
    assert C % H == 0
    D = C // H
    assert D % 2 == 0
    N = B * T

    # Heads per flash step so tiles / stores are a full 128 lanes wide.
    Hg = max(1, min(H, 128 // D)) if D < 128 else 1
    while H % Hg:
        Hg -= 1
    Cg = Hg * D
    G = H // Hg

    block_t = min(T, 64) if block_t is None else block_t      # vreg-pressure cap
    block_q = min(T, 128) if block_q is None else block_q
    block_k = block_q if block_k is None else block_k
    assert block_q == block_k, "kernel assumes square score blocks"
    assert T % block_t == 0 and T % block_q == 0
    if block_n is None:
        block_n = min(N, 256)
        if N // block_n < 2 and N % 2 == 0 and (N // 2) % 8 == 0:
            block_n = N // 2          # keep >=2 parallel steps (v7x megacore)
    assert N % block_n == 0

    f32, bf16 = jnp.float32, jnp.bfloat16
    x_bf = x.astype(bf16)

    # torch nn.Linear: y = x @ W.T + b.  Pre-transpose and cast weights to bf16
    # so the MXU runs at native throughput; biases stay f32.
    w_all = jnp.stack([w_attn[0 * C:1 * C].T,
                       w_attn[1 * C:2 * C].T,
                       w_attn[2 * C:3 * C].T], axis=0).astype(bf16)    # (3,C,C)
    b_all = jnp.stack([b_attn[0 * C:1 * C],
                       b_attn[1 * C:2 * C],
                       b_attn[2 * C:3 * C]], axis=0)[:, None, :].astype(f32)

    cos_tab, sin_next, sin_prev = _rope_tables(T, H, D)
    if _roll_matches_numpy():
        sin_hi, sin_lo = sin_next, sin_prev    # roll(p, C-1) == p[j+1]
    else:
        sin_hi, sin_lo = sin_prev, sin_next    # roll(p, C-1) == p[j-1]

    # ---- 1) fused QKV projection + rotary embedding (bf16 outputs) ----------
    q, k, v = pl.pallas_call(
        _qkv_rope_kernel,
        out_shape=(jax.ShapeDtypeStruct((B, T, C), bf16),) * 3,
        grid_spec=pltpu.PrefetchScalarGridSpec(
            num_scalar_prefetch=0,
            grid=(B, T // block_t),
            in_specs=[
                pl.BlockSpec((1, block_t, C), lambda b, t: (b, t, 0)),
                pl.BlockSpec((3, C, C), lambda b, t: (0, 0, 0)),
                pl.BlockSpec((3, 1, C), lambda b, t: (0, 0, 0)),
                pl.BlockSpec((block_t, C), lambda b, t: (t, 0)),
                pl.BlockSpec((block_t, C), lambda b, t: (t, 0)),
                pl.BlockSpec((block_t, C), lambda b, t: (t, 0)),
            ],
            out_specs=[
                pl.BlockSpec((1, block_t, C), lambda b, t: (b, t, 0)),
                pl.BlockSpec((1, block_t, C), lambda b, t: (b, t, 0)),
                pl.BlockSpec((1, block_t, C), lambda b, t: (b, t, 0)),
            ],
        ),
        compiler_params=pltpu.CompilerParams(
            dimension_semantics=("parallel", "parallel"),
            vmem_limit_bytes=_VMEM_LIMIT),
    )(x_bf, w_all, b_all, cos_tab, sin_hi, sin_lo)

    # ---- 2) flash attention (causal), head-group slabs of (B, T, C) ---------
    flash = functools.partial(
        _flash_attn_kernel, sm_scale=1.0 / math.sqrt(D),
        block_q=block_q, block_k=block_k, heads=Hg, head_dim=D)
    o = pl.pallas_call(
        flash,
        out_shape=jax.ShapeDtypeStruct((B, T, C), bf16),
        grid_spec=pltpu.PrefetchScalarGridSpec(
            num_scalar_prefetch=0,
            grid=(B, G, T // block_q, T // block_k),
            in_specs=[
                pl.BlockSpec((1, block_q, Cg),
                             lambda b, g, qi, ki: (b, qi, g)),
                # Clamp: blocks above the causal diagonal reuse the previous
                # k/v buffer instead of DMAing data that is never used.
                pl.BlockSpec((1, block_k, Cg),
                             lambda b, g, qi, ki: (b, jnp.minimum(qi, ki), g)),
                pl.BlockSpec((1, block_k, Cg),
                             lambda b, g, qi, ki: (b, jnp.minimum(qi, ki), g)),
            ],
            out_specs=pl.BlockSpec((1, block_q, Cg),
                                   lambda b, g, qi, ki: (b, qi, g)),
            scratch_shapes=[
                pltpu.VMEM((block_q, Hg), f32),    # running max (per head)
                pltpu.VMEM((block_q, Hg), f32),    # running denom (per head)
                pltpu.VMEM((block_q, Cg), f32),    # output accumulator
            ],
        ),
        compiler_params=pltpu.CompilerParams(
            dimension_semantics=("parallel", "parallel", "parallel",
                                 "arbitrary"),
            vmem_limit_bytes=_VMEM_LIMIT),
    )(q, k, v)

    # (B, T, C) -> (N, C) is a free reshape: no head-merge transpose needed.
    attn = o.reshape(N, C)

    # ---- 3) output projection (c_proj) ---------------------------------------
    y = pl.pallas_call(
        _linear_kernel,
        out_shape=jax.ShapeDtypeStruct((N, C), f32),
        grid_spec=pltpu.PrefetchScalarGridSpec(
            num_scalar_prefetch=0,
            grid=(N // block_n,),
            in_specs=[
                pl.BlockSpec((block_n, C), lambda i: (i, 0)),
                pl.BlockSpec((C, C), lambda i: (0, 0)),
                pl.BlockSpec((1, C), lambda i: (0, 0)),
            ],
            out_specs=pl.BlockSpec((block_n, C), lambda i: (i, 0)),
        ),
        compiler_params=pltpu.CompilerParams(
            dimension_semantics=("parallel",),
            vmem_limit_bytes=_VMEM_LIMIT),
    )(attn, w_proj.T.astype(bf16), b_proj[None, :].astype(f32))

    return y.reshape(B, T, C)


# --------------------------------------------------------------------------- #
# Pure-JAX reference mirroring the PyTorch forward exactly (f32)
# --------------------------------------------------------------------------- #
def _rope_interleaved_ref(x, base=10000.0):
    b, s, nh, hd = x.shape
    j = jnp.arange(hd // 2, dtype=jnp.float32)
    theta = 1.0 / (base ** (2.0 * j / hd))
    ang = jnp.arange(s, dtype=jnp.float32)[:, None] * theta[None, :]   # (s, hd/2)
    cos = jnp.cos(ang)[None, :, None, :]
    sin = jnp.sin(ang)[None, :, None, :]
    xr = x.reshape(b, s, nh, hd // 2, 2)
    x0, x1 = xr[..., 0], xr[..., 1]
    out = jnp.stack([x0 * cos - x1 * sin, x1 * cos + x0 * sin], axis=-1)
    return out.reshape(b, s, nh, hd)


def attention_reference(x, w_attn, b_attn, w_proj, b_proj, n_head):
    B, T, C = x.shape
    H, D = n_head, C // n_head
    qkv = x @ w_attn.T + b_attn
    q, k, v = jnp.split(qkv, 3, axis=-1)
    q = q.reshape(B, T, H, D)
    k = k.reshape(B, T, H, D)
    v = v.reshape(B, T, H, D)
    q = _rope_interleaved_ref(q)
    k = _rope_interleaved_ref(k)
    q = q.transpose(0, 2, 1, 3)
    k = k.transpose(0, 2, 1, 3)
    v = v.transpose(0, 2, 1, 3)
    q = _rope_interleaved_ref(q)   # second application: "positions" = head index
    k = _rope_interleaved_ref(k)
    s = jnp.einsum('bhqd,bhkd->bhqk', q, k) / math.sqrt(D)
    causal = jnp.tril(jnp.ones((T, T), dtype=bool))
    s = jnp.where(causal[None, None], s, -jnp.inf)
    p = jax.nn.softmax(s, axis=-1)
    o = jnp.einsum('bhqk,bhkd->bhqd', p, v)
    o = o.transpose(0, 2, 1, 3).reshape(B, T, C)
    return o @ w_proj.T + b_proj


# --------------------------------------------------------------------------- #
if __name__ == "__main__":
    B, T, C, H = 2, 128, 128, 4        # n_embd=128, n_head=4, head_dim=32

    key = jax.random.PRNGKey(0)
    ks = jax.random.split(key, 5)
    x = jax.random.normal(ks[0], (B, T, C), jnp.float32)
    bound = 1.0 / math.sqrt(C)                              # nn.Linear default init
    w_attn = jax.random.uniform(ks[1], (3 * C, C), jnp.float32, -bound, bound)
    b_attn = jax.random.uniform(ks[2], (3 * C,), jnp.float32, -bound, bound)
    w_proj = jax.random.uniform(ks[3], (C, C), jnp.float32, -bound, bound)
    b_proj = jax.random.uniform(ks[4], (C,), jnp.float32, -bound, bound)

    out = attention_forward(x, w_attn, b_attn, w_proj, b_proj, n_head=H)
    out = jax.block_until_ready(out)

    ref = attention_reference(x, w_attn, b_attn, w_proj, b_proj, H)
    assert out.shape == (B, T, C)
    assert bool(jnp.isfinite(out).all())
    max_err = float(jnp.max(jnp.abs(out - ref)))
    rel_err = float(jnp.linalg.norm(out - ref) / jnp.linalg.norm(ref))
    # bf16 MXU pipeline vs f32 reference: tolerance widened accordingly.
    assert max_err < 1e-1 and rel_err < 5e-2, (
        f"max abs err {max_err}, rel err {rel_err} vs reference")

    print("KERNEL_OK")
</pallas_src>

<mosaic_0001>
module attributes {stable_mosaic.version = 11 : i64} {
  func.func @kern(%arg0: memref<8x128xf32, #tpu.memory_space<vmem>>, %arg1: memref<8x128xf32, #tpu.memory_space<vmem>>) attributes {dimension_semantics = [], scalar_prefetch = 0 : i64, scratch_operands = 0 : i64, tpu.core_type = #tpu.core_type<tc>} {
    %c0 = arith.constant 0 : index
    %c0_0 = arith.constant 0 : index
    %0 = vector.load %arg0[%c0, %c0_0] : memref<8x128xf32, #tpu.memory_space<vmem>>, vector<8x128xf32>
    %c1_i32 = arith.constant 1 : i32
    %1 = tpu.dynamic_rotate %0 by %c1_i32 dim 1 : vector<8x128xf32>, i32 -> vector<8x128xf32>
    %c0_1 = arith.constant 0 : index
    %c0_2 = arith.constant 0 : index
    %2 = vector.load %arg1[%c0_1, %c0_2] : memref<8x128xf32, #tpu.memory_space<vmem>>, vector<8x128xf32>
    tpu.vector_store %arg1[%c0_1, %c0_2], %1 {strides = array<i32>} : memref<8x128xf32, #tpu.memory_space<vmem>>, vector<8x128xf32>,
    return
  }
}

</mosaic_0001>

<bundles_post_ra>
// kernel: tpu_custom_call.1
= control target key start
LH: loop header
LB: loop body
LE: loop exit
PB: predicated region body
PF: predicated region fallthrough
CT: control target
= control target key end

     0   :  { %6 = vsyncpa [#allocation3], 0  ;;  %s106_s0 = inlined_call_operand.hbm [shape: f32[8,128], index: 0, kind: input, shape index: {}]   ;;  %s107_s1 = inlined_call_operand.hbm [shape: f32[8,128], index: 1, kind: output, shape index: {}]  }
   0x1   :  { %7 = vsyncpa [#allocation4], 0  ;;  %s87_s6 = smov [#allocation2]  }
   0x2   :  { %s14_s7 = sshll.u32 %s87_s6, 4  ;;  %s15_s7 = int_to_ptr.vmem [resolvable:$true] %s14_s7 }
   0x3   :  { %s51_s8 = scalar_lea.vmem %s15_s7, 128  ;;  %p56_p1 = scmp.lt.s32.totalorder %s15_s7, %s15_s7 }
   0x4   :  { %p52_p0 = scmp.ne.s32.totalorder %s15_s7, %s51_s8  ;;  %p57_p2 = scmp.lt.s32.totalorder %s51_s8, %s51_s8 }
   0x6   :  { %p58_p3 = por %p57_p2, %p56_p1 }
   0x8   :  { %p59_p4 = pnand %p58_p3, %p52_p0 }
   0xa   :  { %62 = shalt.err (!%p59_p4)
}
   0xb   :  { %17 = dma.hbm_to_vmem [thread:$0]  %s106_s0, 128, %s15_s7, [#allocation3]  }
   0xc   :  { %83 = dma.done.wait [#allocation3], 128  }
   0xd   :  { %84 = vsyncadd [#allocation3], 4294967168  ;;  %v21_v0 = vld [vmem:[#allocation2] sm:$0xff]  ;;  %s88_s11 = smov 1   ;;  %s89_s12 = smov [#allocation5]  }
   0xe   :  { %22 = vrot.lane.b32.xlu0 %v21_v0, %s88_s11  ;;  %s31_s13 = sshll.u32 %s89_s12, 4  ;;  %s32_s13 = int_to_ptr.vmem [resolvable:$true] %s31_s13 }
   0xf   :  { %s63_s14 = scalar_lea.vmem %s32_s13, 128  ;;  %p68_p6 = scmp.lt.s32.totalorder %s32_s13, %s32_s13 }
  0x10   :  { %p64_p5 = scmp.ne.s32.totalorder %s32_s13, %s63_s14  ;;  %p69_p7 = scmp.lt.s32.totalorder %s63_s14, %s63_s14 }
  0x12   :  { %p70_p8 = por %p69_p7, %p68_p6 }
  0x14   :  { %p71_p9 = pnand %p70_p8, %p64_p5 }
  0x80   :  { %v23_v1 = vpop.permute.xlu0 %22 }
  0x81   :  { %24 = vst [vmem:[#allocation5] sm:$0xff] %v23_v1 }
  0x82   :  { %74 = shalt.err (!%p71_p9)
}
  0x83   :  { %34 = dma.vmem_to_hbm [thread:$0]  %s32_s13, 128, %s107_s1, [#allocation4]  }
  0x84   :  { %85 = dma.done.wait [#allocation4], 128  }
  0x85   :  { %86 = vsyncadd [#allocation4], 4294967168 }
  0x86   :  { %38 = vsyncpa [#allocation3], 1 }
  0x87   :  { %39 = vsyncpa [#allocation4], 1 }

</bundles_post_ra>
